<compile_context>
chip_gen: v6e
topology: v6e:2x2x1
jax: 0.10.0
libtpu: 0.0.40
codegen_flags: <defaults>
</compile_context>

<pallas_src>
import jax
import jax.numpy as jnp
from jax import lax
from jax.experimental import pallas as pl
from jax.experimental.pallas import tpu as pltpu


# ---------------------------------------------------------------------------
# Kernel 1: nearest-neighbor 2x upsample of the spatial dims (NHWC inside).
# ---------------------------------------------------------------------------
def _upsample2x_kernel(x_ref, o_ref):
    # x_ref: (1, th, W, C)     o_ref: (1, th, 2, W, 2*C)
    # Packed output view: o[n, h, r, w, wp*C + c] == out[n, 2h+r, 2w+wp, c]
    x = x_ref[...]
    c = x.shape[-1]
    for r in range(2):            # output row phase (2h + r)
        for wp in range(2):       # output col phase (2w + wp), packed along lanes
            o_ref[:, :, r, :, wp * c:(wp + 1) * c] = x


def _pick_h_tile(h, w, c, itemsize, budget_bytes=1 << 21):
    # Largest divisor of h whose (input + 4x output) blocks stay well inside VMEM.
    for th in range(h, 0, -1):
        if h % th == 0 and 5 * th * w * c * itemsize <= budget_bytes:
            return th
    return 1


def upsample_nearest2x_nchw(x):
    """x: (N, C, H, W) -> (N, C, 2H, 2W); nearest (matches F.interpolate scale_factor=2)."""
    n, c, h, w = x.shape
    x_nhwc = jnp.transpose(x, (0, 2, 3, 1))                # channels -> lane axis
    th = _pick_h_tile(h, w, c, x.dtype.itemsize)
    out = pl.pallas_call(
        _upsample2x_kernel,
        out_shape=jax.ShapeDtypeStruct((n, h, 2, w, 2 * c), x.dtype),
        grid=(n, h // th),
        in_specs=[pl.BlockSpec((1, th, w, c), lambda i, j: (i, j, 0, 0))],
        out_specs=pl.BlockSpec((1, th, 2, w, 2 * c), lambda i, j: (i, j, 0, 0, 0)),
        compiler_params=pltpu.CompilerParams(
            dimension_semantics=("parallel", "parallel")),
    )(x_nhwc)
    out = out.reshape(n, 2 * h, 2 * w, c)                  # free: identical memory layout
    return jnp.transpose(out, (0, 3, 1, 2))                # back to NCHW


# ---------------------------------------------------------------------------
# Kernel 2: 3x3 convolution (stride 1), NHWC, zero-padding applied in the wrapper.
# Nine shifted-slice MXU matmuls with f32 accumulation.
# ---------------------------------------------------------------------------
def _conv3x3_kernel(xp_ref, w_ref, b_ref, o_ref):
    # xp_ref: (1, Hp, Wp, Cin)   w_ref: (3, 3, Cin, Cout)   b_ref: (1, Cout)
    # o_ref : (1, Ho, Wo, Cout)  with Ho = Hp - 2, Wo = Wp - 2
    _, ho, wo, cout = o_ref.shape
    cin = xp_ref.shape[-1]
    acc = jnp.zeros((ho * wo, cout), dtype=jnp.float32)
    for dh in range(3):
        for dw in range(3):
            patch = xp_ref[0, dh:dh + ho, dw:dw + wo, :]   # (Ho, Wo, Cin)
            acc = acc + jnp.dot(patch.reshape(ho * wo, cin),
                                w_ref[dh, dw],
                                preferred_element_type=jnp.float32)
    acc = acc + b_ref[...].astype(jnp.float32)             # (1, Cout) broadcasts
    o_ref[0] = acc.reshape(ho, wo, cout).astype(o_ref.dtype)


def conv3x3_nchw(x, w_oihw, bias, padding=1):
    """x: (N, Cin, H, W), w_oihw: (Cout, Cin, 3, 3), bias: (Cout,) -> (N, Cout, Ho, Wo)."""
    # TODO(synk): for very large feature maps, tile H/W with 1-pixel halos and tile
    # Cin/Cout so activations + weights fit VMEM; full-spatial per-batch blocks here.
    n, cin, h, w = x.shape
    cout = w_oihw.shape[0]
    p = padding
    x_nhwc = jnp.transpose(x, (0, 2, 3, 1))
    xp = jnp.pad(x_nhwc, ((0, 0), (p, p), (p, p), (0, 0)))
    hp, wp = h + 2 * p, w + 2 * p
    ho, wo = hp - 2, wp - 2
    w_hwio = jnp.transpose(w_oihw, (2, 3, 1, 0))           # (3, 3, Cin, Cout)
    b2 = bias.reshape(1, cout)
    out = pl.pallas_call(
        _conv3x3_kernel,
        out_shape=jax.ShapeDtypeStruct((n, ho, wo, cout), x.dtype),
        grid=(n,),
        in_specs=[
            pl.BlockSpec((1, hp, wp, cin), lambda i: (i, 0, 0, 0)),
            pl.BlockSpec((3, 3, cin, cout), lambda i: (0, 0, 0, 0)),
            pl.BlockSpec((1, cout), lambda i: (0, 0)),
        ],
        out_specs=pl.BlockSpec((1, ho, wo, cout), lambda i: (i, 0, 0, 0)),
        compiler_params=pltpu.CompilerParams(dimension_semantics=("parallel",)),
    )(xp, w_hwio, b2)
    return jnp.transpose(out, (0, 3, 1, 2))


# ---------------------------------------------------------------------------
# Module wrapper mirroring the PyTorch UpSample forward.
# ---------------------------------------------------------------------------
class UpSample:
    """Pallas port of the PyTorch UpSample module (dims=2 supported)."""

    def __init__(self, channels, use_conv, dims=2, out_channels=None, padding=1,
                 *, key=None, dtype=jnp.float32):
        if dims != 2:
            # TODO(synk): dims=1 / dims=3 interpolate variants and conv_nd(1/3) not ported.
            raise NotImplementedError("Only dims=2 is implemented in the Pallas port.")
        self.channels = channels
        self.out_channels = out_channels or channels
        self.use_conv = use_conv
        self.dims = dims
        self.padding = padding
        if use_conv:
            if key is None:
                key = jax.random.PRNGKey(0)
            kw, kb = jax.random.split(key)
            fan_in = channels * 9
            bound = 1.0 / (fan_in ** 0.5)
            self.weight = jax.random.uniform(
                kw, (self.out_channels, channels, 3, 3), dtype, -bound, bound)
            self.bias = jax.random.uniform(
                kb, (self.out_channels,), dtype, -bound, bound)
        else:
            self.weight = None
            self.bias = None

    def __call__(self, x):
        assert x.shape[1] == self.channels, "channel dim of x must equal self.channels"
        y = upsample_nearest2x_nchw(x)
        if self.use_conv:
            y = conv3x3_nchw(y, self.weight, self.bias, padding=self.padding)
        return y


# ---------------------------------------------------------------------------
# Pure-JAX reference mirroring the PyTorch forward exactly.
# ---------------------------------------------------------------------------
def _reference_forward(x, module):
    y = jnp.repeat(jnp.repeat(x, 2, axis=2), 2, axis=3)    # nearest, scale_factor=2
    if module.use_conv:
        p = module.padding
        y = lax.conv_general_dilated(
            y, module.weight, window_strides=(1, 1),
            padding=((p, p), (p, p)),
            dimension_numbers=("NCHW", "OIHW", "NCHW"),
            precision=lax.Precision.HIGHEST,
        ) + module.bias[None, :, None, None]
    return y


if __name__ == "__main__":
    key = jax.random.PRNGKey(0)
    kx, kp = jax.random.split(key)
    N, C, H, W = 2, 4, 16, 16
    x = jax.random.normal(kx, (N, C, H, W), dtype=jnp.float32)

    # Path 1: plain nearest-neighbor 2x upsample (use_conv=False).
    up = UpSample(channels=C, use_conv=False)
    y0 = jax.block_until_ready(up(x))
    ref0 = _reference_forward(x, up)
    assert y0.shape == (N, C, 2 * H, 2 * W), y0.shape
    assert jnp.allclose(y0, ref0, atol=1e-6, rtol=0.0), "upsample mismatch vs reference"

    # Path 2: upsample followed by the 3x3 'same' convolution (use_conv=True).
    upc = UpSample(channels=C, use_conv=True, key=kp)
    y1 = jax.block_until_ready(upc(x))
    ref1 = _reference_forward(x, upc)
    assert y1.shape == (N, C, 2 * H, 2 * W), y1.shape
    assert jnp.allclose(y1, ref1, atol=1e-3, rtol=1e-3), "upsample+conv mismatch vs reference"

    print("KERNEL_OK")
</pallas_src>

<mosaic_0001>
module attributes {stable_mosaic.version = 11 : i64} {
  func.func @_upsample2x_kernel(%arg0: i32, %arg1: i32, %arg2: memref<1x16x16x4xf32, #tpu.memory_space<vmem>>, %arg3: memref<1x16x2x16x8xf32, #tpu.memory_space<vmem>>) attributes {dimension_semantics = [#tpu.dimension_semantics<parallel>, #tpu.dimension_semantics<parallel>], iteration_bounds = array<i64: 2, 1>, scalar_prefetch = 0 : i64, scratch_operands = 0 : i64, tpu.core_type = #tpu.core_type<tc>, window_params = [{transform_indices = @transform_0, window_bounds = array<i64: 1, 16, 16, 4>}, {transform_indices = @transform_1, window_bounds = array<i64: 1, 16, 2, 16, 8>}]} {
    %c0 = arith.constant 0 : index
    %c0_0 = arith.constant 0 : index
    %c0_1 = arith.constant 0 : index
    %c0_2 = arith.constant 0 : index
    %0 = vector.load %arg2[%c0, %c0_0, %c0_1, %c0_2] : memref<1x16x16x4xf32, #tpu.memory_space<vmem>>, vector<1x16x16x4xf32>
    %c0_3 = arith.constant 0 : index
    %c0_4 = arith.constant 0 : index
    %c0_5 = arith.constant 0 : index
    %c0_6 = arith.constant 0 : index
    %c0_7 = arith.constant 0 : index
    %1 = vector.load %arg3[%c0_3, %c0_4, %c0_5, %c0_6, %c0_7] : memref<1x16x2x16x8xf32, #tpu.memory_space<vmem>>, vector<1x16x1x16x4xf32>
    %2 = vector.shape_cast %1 : vector<1x16x1x16x4xf32> to vector<1x16x16x4xf32>
    %3 = vector.shape_cast %0 : vector<1x16x16x4xf32> to vector<1x16x1x16x4xf32>
    tpu.vector_store %arg3[%c0_3, %c0_4, %c0_5, %c0_6, %c0_7], %3 {strides = array<i32>} : memref<1x16x2x16x8xf32, #tpu.memory_space<vmem>>, vector<1x16x1x16x4xf32>,
    %c0_8 = arith.constant 0 : index
    %c0_9 = arith.constant 0 : index
    %c0_10 = arith.constant 0 : index
    %c0_11 = arith.constant 0 : index
    %c4 = arith.constant 4 : index
    %4 = vector.load %arg3[%c0_8, %c0_9, %c0_10, %c0_11, %c4] : memref<1x16x2x16x8xf32, #tpu.memory_space<vmem>>, vector<1x16x1x16x4xf32>
    %5 = vector.shape_cast %4 : vector<1x16x1x16x4xf32> to vector<1x16x16x4xf32>
    %6 = vector.shape_cast %0 : vector<1x16x16x4xf32> to vector<1x16x1x16x4xf32>
    tpu.vector_store %arg3[%c0_8, %c0_9, %c0_10, %c0_11, %c4], %6 {strides = array<i32>} : memref<1x16x2x16x8xf32, #tpu.memory_space<vmem>>, vector<1x16x1x16x4xf32>,
    %c0_12 = arith.constant 0 : index
    %c0_13 = arith.constant 0 : index
    %c1 = arith.constant 1 : index
    %c0_14 = arith.constant 0 : index
    %c0_15 = arith.constant 0 : index
    %7 = vector.load %arg3[%c0_12, %c0_13, %c1, %c0_14, %c0_15] : memref<1x16x2x16x8xf32, #tpu.memory_space<vmem>>, vector<1x16x1x16x4xf32>
    %8 = vector.shape_cast %7 : vector<1x16x1x16x4xf32> to vector<1x16x16x4xf32>
    %9 = vector.shape_cast %0 : vector<1x16x16x4xf32> to vector<1x16x1x16x4xf32>
    tpu.vector_store %arg3[%c0_12, %c0_13, %c1, %c0_14, %c0_15], %9 {strides = array<i32>} : memref<1x16x2x16x8xf32, #tpu.memory_space<vmem>>, vector<1x16x1x16x4xf32>,
    %c0_16 = arith.constant 0 : index
    %c0_17 = arith.constant 0 : index
    %c1_18 = arith.constant 1 : index
    %c0_19 = arith.constant 0 : index
    %c4_20 = arith.constant 4 : index
    %10 = vector.load %arg3[%c0_16, %c0_17, %c1_18, %c0_19, %c4_20] : memref<1x16x2x16x8xf32, #tpu.memory_space<vmem>>, vector<1x16x1x16x4xf32>
    %11 = vector.shape_cast %10 : vector<1x16x1x16x4xf32> to vector<1x16x16x4xf32>
    %12 = vector.shape_cast %0 : vector<1x16x16x4xf32> to vector<1x16x1x16x4xf32>
    tpu.vector_store %arg3[%c0_16, %c0_17, %c1_18, %c0_19, %c4_20], %12 {strides = array<i32>} : memref<1x16x2x16x8xf32, #tpu.memory_space<vmem>>, vector<1x16x1x16x4xf32>,
    return
  }
  func.func @transform_0(%arg0: i32, %arg1: i32) -> (i32, i32, i32, i32) {
    %c0_i32 = arith.constant 0 : i32
    %c0_i32_0 = arith.constant 0 : i32
    %c0_i32_1 = arith.constant 0 : i32
    return %arg0, %arg1, %c0_i32, %c0_i32_0 : i32, i32, i32, i32
  }
  func.func @transform_1(%arg0: i32, %arg1: i32) -> (i32, i32, i32, i32, i32) {
    %c0_i32 = arith.constant 0 : i32
    %c0_i32_0 = arith.constant 0 : i32
    %c0_i32_1 = arith.constant 0 : i32
    %c0_i32_2 = arith.constant 0 : i32
    return %arg0, %arg1, %c0_i32, %c0_i32_0, %c0_i32_1 : i32, i32, i32, i32, i32
  }
}

</mosaic_0001>

<bundles_post_ra>
// kernel: tpu_custom_call.1
= control target key start
LH: loop header
LB: loop body
LE: loop exit
PB: predicated region body
PF: predicated region fallthrough
CT: control target
= control target key end

     0   :  { %s685_s6 = smov 0   ;;  %s687_s7 = smov 0   ;;  %s1092_s0 = inlined_call_operand.vmem [shape: f32[2,16,16,4], index: 0, kind: input, shape index: {}]   ;;  %s1093_s1 = inlined_call_operand.vmem [shape: f32[2,16,2,16,8], index: 1, kind: output, shape index: {}]  }
   0x1   :  { %s689_s8 = smov 0  }
   0x2 LB: > { %s23_s9 = sadd.s32 1, %s668_s7  ;;  %p552_p0 = scmp.ge.s32.totalorder %s672_s8, 1  ;;  %s672_s8 = sphi %s689_s8, %s11_s8   ;;  %s668_s7 = sphi %s687_s7, %s1095_s7   ;;  %s664_s6 = sphi %s685_s6, %s1094_s6  }
   0x3   : > { %p25_p1 = scmp.ge.s32.totalorder %s23_s9, 2  ;;  %p109_p2 = scmp.lt.s32.totalorder %s672_s8, 3 }
   0x5   : > { %s1097_s9 = smov (%p25_p1, %s23_s9), 0  ;;  %p110_p3 = pnand %p552_p0, %p109_p2 }
   0x6   : > { %p140_p4 = scmp.lt.s32.totalorder (!%p110_p3), %s664_s6, 1  ;;  %s674_s18 = smov (!%p110_p3), 4  }
   0x7   : > { %113 = sbr.rel (%p110_p3) target bundleno = 198 (0xc6), region = 24 }
   0xc   : > { %s1099_s6 = smov (!%p140_p4, %s664_s6), 1  ;;  %vm193_vm0 = vcmask 31744   ;;  %vm354_vm1 = vcmask 64544  }
   0xd   : > { %s623_s10 = sshll.u32 %s1099_s6, 8  ;;  %s624_s11 = sshll.u32 %s1099_s6, 9 }
   0xe   : > { %s706_s14 = scalar_lea.vmem %s1092_s0, %s623_s10  ;;  %s711_s17 = scalar_lea.vmem %s1093_s1, %s624_s11 }
   0xf   : > { %v163_v0 = vld [vmem:[%s706_s14 + $0x10] sm:$0xff]  ;;  %v161_v1 = vld [vmem:[%s706_s14] sm:$0xff]  ;;  %v164_v2 = vld [vmem:[%s706_s14 + $0x18] sm:$0xff] }
  0x10   : > { %262 = vrot.lane.b32.xlu1 %v163_v0, %s674_s18  ;;  %196 = vst.msk [vmem:[%s711_s17 + $0x20] sm:$0xff] %vm193_vm0, %v163_v0  ;;  %559 = vst.msk [vmem:[%s711_s17 + $0x30] sm:$0xff] %vm193_vm0, %v163_v0  ;;  %258 = vrot.lane.b32.xlu0 %v161_v1, %s674_s18 }
  0x11   : > { %194 = vst.msk [vmem:[%s711_s17] sm:$0xff] %vm193_vm0, %v161_v1  ;;  %557 = vst.msk [vmem:[%s711_s17 + $0x10] sm:$0xff] %vm193_vm0, %v161_v1  ;;  %v162_v3 = vld [vmem:[%s706_s14 + $0x8] sm:$0xff]  ;;  %v165_v5 = vld [vmem:[%s706_s14 + $0x20] sm:$0xff] }
  0x12   : > { %197 = vst.msk [vmem:[%s711_s17 + $0x28] sm:$0xff] %vm193_vm0, %v164_v2  ;;  %560 = vst.msk [vmem:[%s711_s17 + $0x38] sm:$0xff] %vm193_vm0, %v164_v2  ;;  %v166_v4 = vld [vmem:[%s706_s14 + $0x28] sm:$0xff]  ;;  %v742_v6 = vld [vmem:[%s706_s14 + $0x38] sm:$0xff] }
  0x13   : > { %195 = vst.msk [vmem:[%s711_s17 + $0x8] sm:$0xff] %vm193_vm0, %v162_v3  ;;  %558 = vst.msk [vmem:[%s711_s17 + $0x18] sm:$0xff] %vm193_vm0, %v162_v3  ;;  %v745_v7 = vld [vmem:[%s706_s14 + $0x30] sm:$0xff]  ;;  %v764_v8 = vld [vmem:[%s706_s14 + $0x48] sm:$0xff] }
  0x14   : > { %199 = vst.msk [vmem:[%s711_s17 + $0x48] sm:$0xff] %vm193_vm0, %v166_v4  ;;  %562 = vst.msk [vmem:[%s711_s17 + $0x58] sm:$0xff] %vm193_vm0, %v166_v4  ;;  %v767_v9 = vld [vmem:[%s706_s14 + $0x40] sm:$0xff]  ;;  %v770_v10 = vld [vmem:[%s706_s14 + $0x58] sm:$0xff] }
  0x15   : > { %198 = vst.msk [vmem:[%s711_s17 + $0x40] sm:$0xff] %vm193_vm0, %v165_v5  ;;  %561 = vst.msk [vmem:[%s711_s17 + $0x50] sm:$0xff] %vm193_vm0, %v165_v5  ;;  %v791_v11 = vld [vmem:[%s706_s14 + $0x50] sm:$0xff]  ;;  %v794_v12 = vld [vmem:[%s706_s14 + $0x68] sm:$0xff] }
  0x16   : > { %201 = vst.msk [vmem:[%s711_s17 + $0x68] sm:$0xff] %vm193_vm0, %v742_v6  ;;  %564 = vst.msk [vmem:[%s711_s17 + $0x78] sm:$0xff] %vm193_vm0, %v742_v6  ;;  %v797_v13 = vld [vmem:[%s706_s14 + $0x60] sm:$0xff]  ;;  %264 = vrot.lane.b32.xlu1 %v164_v2, %s674_s18 }
  0x17   : > { %200 = vst.msk [vmem:[%s711_s17 + $0x60] sm:$0xff] %vm193_vm0, %v745_v7  ;;  %563 = vst.msk [vmem:[%s711_s17 + $0x70] sm:$0xff] %vm193_vm0, %v745_v7  ;;  %260 = vrot.lane.b32.xlu0 %v162_v3, %s674_s18  ;;  %v820_v14 = vld [vmem:[%s706_s14 + $0x78] sm:$0xff] }
  0x18   : > { %203 = vst.msk [vmem:[%s711_s17 + $0x88] sm:$0xff] %vm193_vm0, %v764_v8  ;;  %566 = vst.msk [vmem:[%s711_s17 + $0x98] sm:$0xff] %vm193_vm0, %v764_v8  ;;  %v823_v15 = vld [vmem:[%s706_s14 + $0x70] sm:$0xff]  ;;  %v178_v16 = vld [vmem:[%s706_s14 + $0x88] sm:$0xff] }
  0x19   : > { %202 = vst.msk [vmem:[%s711_s17 + $0x80] sm:$0xff] %vm193_vm0, %v767_v9  ;;  %565 = vst.msk [vmem:[%s711_s17 + $0x90] sm:$0xff] %vm193_vm0, %v767_v9  ;;  %v177_v17 = vld [vmem:[%s706_s14 + $0x80] sm:$0xff]  ;;  %v180_v18 = vld [vmem:[%s706_s14 + $0x98] sm:$0xff] }
  0x1a   : > { %205 = vst.msk [vmem:[%s711_s17 + $0xa8] sm:$0xff] %vm193_vm0, %v770_v10  ;;  %568 = vst.msk [vmem:[%s711_s17 + $0xb8] sm:$0xff] %vm193_vm0, %v770_v10  ;;  %v179_v19 = vld [vmem:[%s706_s14 + $0x90] sm:$0xff]  ;;  %v182_v20 = vld [vmem:[%s706_s14 + $0xa8] sm:$0xff] }
  0x1b   : > { %204 = vst.msk [vmem:[%s711_s17 + $0xa0] sm:$0xff] %vm193_vm0, %v791_v11  ;;  %567 = vst.msk [vmem:[%s711_s17 + $0xb0] sm:$0xff] %vm193_vm0, %v791_v11  ;;  %v181_v21 = vld [vmem:[%s706_s14 + $0xa0] sm:$0xff]  ;;  %v184_v22 = vld [vmem:[%s706_s14 + $0xb8] sm:$0xff] }
  0x1c   : > { %207 = vst.msk [vmem:[%s711_s17 + $0xc8] sm:$0xff] %vm193_vm0, %v794_v12  ;;  %570 = vst.msk [vmem:[%s711_s17 + $0xd8] sm:$0xff] %vm193_vm0, %v794_v12  ;;  %v183_v23 = vld [vmem:[%s706_s14 + $0xb0] sm:$0xff]  ;;  %v186_v24 = vld [vmem:[%s706_s14 + $0xc8] sm:$0xff] }
  0x1d   : > { %206 = vst.msk [vmem:[%s711_s17 + $0xc0] sm:$0xff] %vm193_vm0, %v797_v13  ;;  %569 = vst.msk [vmem:[%s711_s17 + $0xd0] sm:$0xff] %vm193_vm0, %v797_v13  ;;  %268 = vrot.lane.b32.xlu1 %v166_v4, %s674_s18  ;;  %266 = vrot.lane.b32.xlu0 %v165_v5, %s674_s18 }
  0x1e   : > { %209 = vst.msk [vmem:[%s711_s17 + $0xe8] sm:$0xff] %vm193_vm0, %v820_v14  ;;  %572 = vst.msk [vmem:[%s711_s17 + $0xf8] sm:$0xff] %vm193_vm0, %v820_v14  ;;  %v185_v25 = vld [vmem:[%s706_s14 + $0xc0] sm:$0xff]  ;;  %v188_v26 = vld [vmem:[%s706_s14 + $0xd8] sm:$0xff] }
  0x1f   : > { %208 = vst.msk [vmem:[%s711_s17 + $0xe0] sm:$0xff] %vm193_vm0, %v823_v15  ;;  %571 = vst.msk [vmem:[%s711_s17 + $0xf0] sm:$0xff] %vm193_vm0, %v823_v15  ;;  %v187_v27 = vld [vmem:[%s706_s14 + $0xd0] sm:$0xff]  ;;  %v190_v28 = vld [vmem:[%s706_s14 + $0xe8] sm:$0xff] }
  0x20   : > { %211 = vst.msk [vmem:[%s711_s17 + $0x108] sm:$0xff] %vm193_vm0, %v178_v16  ;;  %574 = vst.msk [vmem:[%s711_s17 + $0x118] sm:$0xff] %vm193_vm0, %v178_v16  ;;  %v189_v29 = vld [vmem:[%s706_s14 + $0xe0] sm:$0xff]  ;;  %v192_v30 = vld [vmem:[%s706_s14 + $0xf8] sm:$0xff] }
  0x21   : > { %210 = vst.msk [vmem:[%s711_s17 + $0x100] sm:$0xff] %vm193_vm0, %v177_v17  ;;  %573 = vst.msk [vmem:[%s711_s17 + $0x110] sm:$0xff] %vm193_vm0, %v177_v17  ;;  %v191_v31 = vld [vmem:[%s706_s14 + $0xf0] sm:$0xff]  ;;  %272 = vrot.lane.b32.xlu1 %v742_v6, %s674_s18 }
  0x22   : > { %213 = vst.msk [vmem:[%s711_s17 + $0x128] sm:$0xff] %vm193_vm0, %v180_v18  ;;  %576 = vst.msk [vmem:[%s711_s17 + $0x138] sm:$0xff] %vm193_vm0, %v180_v18  ;;  %270 = vrot.lane.b32.xlu0 %v745_v7, %s674_s18 }
  0x23   : > { %212 = vst.msk [vmem:[%s711_s17 + $0x120] sm:$0xff] %vm193_vm0, %v179_v19  ;;  %575 = vst.msk [vmem:[%s711_s17 + $0x130] sm:$0xff] %vm193_vm0, %v179_v19 }
  0x24   : > { %215 = vst.msk [vmem:[%s711_s17 + $0x148] sm:$0xff] %vm193_vm0, %v182_v20  ;;  %578 = vst.msk [vmem:[%s711_s17 + $0x158] sm:$0xff] %vm193_vm0, %v182_v20 }
  0x25   : > { %214 = vst.msk [vmem:[%s711_s17 + $0x140] sm:$0xff] %vm193_vm0, %v181_v21  ;;  %577 = vst.msk [vmem:[%s711_s17 + $0x150] sm:$0xff] %vm193_vm0, %v181_v21  ;;  %276 = vrot.lane.b32.xlu1 %v764_v8, %s674_s18 }
  0x26   : > { %217 = vst.msk [vmem:[%s711_s17 + $0x168] sm:$0xff] %vm193_vm0, %v184_v22  ;;  %580 = vst.msk [vmem:[%s711_s17 + $0x178] sm:$0xff] %vm193_vm0, %v184_v22  ;;  %274 = vrot.lane.b32.xlu0 %v767_v9, %s674_s18 }
  0x27   : > { %216 = vst.msk [vmem:[%s711_s17 + $0x160] sm:$0xff] %vm193_vm0, %v183_v23  ;;  %579 = vst.msk [vmem:[%s711_s17 + $0x170] sm:$0xff] %vm193_vm0, %v183_v23 }
  0x28   : > { %219 = vst.msk [vmem:[%s711_s17 + $0x188] sm:$0xff] %vm193_vm0, %v186_v24  ;;  %582 = vst.msk [vmem:[%s711_s17 + $0x198] sm:$0xff] %vm193_vm0, %v186_v24 }
  0x29   : > { %218 = vst.msk [vmem:[%s711_s17 + $0x180] sm:$0xff] %vm193_vm0, %v185_v25  ;;  %581 = vst.msk [vmem:[%s711_s17 + $0x190] sm:$0xff] %vm193_vm0, %v185_v25  ;;  %280 = vrot.lane.b32.xlu1 %v770_v10, %s674_s18 }
  0x2a   : > { %221 = vst.msk [vmem:[%s711_s17 + $0x1a8] sm:$0xff] %vm193_vm0, %v188_v26  ;;  %584 = vst.msk [vmem:[%s711_s17 + $0x1b8] sm:$0xff] %vm193_vm0, %v188_v26  ;;  %278 = vrot.lane.b32.xlu0 %v791_v11, %s674_s18 }
  0x2b   : > { %220 = vst.msk [vmem:[%s711_s17 + $0x1a0] sm:$0xff] %vm193_vm0, %v187_v27  ;;  %583 = vst.msk [vmem:[%s711_s17 + $0x1b0] sm:$0xff] %vm193_vm0, %v187_v27 }
  0x2c   : > { %223 = vst.msk [vmem:[%s711_s17 + $0x1c8] sm:$0xff] %vm193_vm0, %v190_v28  ;;  %586 = vst.msk [vmem:[%s711_s17 + $0x1d8] sm:$0xff] %vm193_vm0, %v190_v28 }
  0x2d   : > { %222 = vst.msk [vmem:[%s711_s17 + $0x1c0] sm:$0xff] %vm193_vm0, %v189_v29  ;;  %585 = vst.msk [vmem:[%s711_s17 + $0x1d0] sm:$0xff] %vm193_vm0, %v189_v29  ;;  %284 = vrot.lane.b32.xlu1 %v794_v12, %s674_s18 }
  0x2e   : > { %225 = vst.msk [vmem:[%s711_s17 + $0x1e8] sm:$0xff] %vm193_vm0, %v192_v30  ;;  %588 = vst.msk [vmem:[%s711_s17 + $0x1f8] sm:$0xff] %vm193_vm0, %v192_v30  ;;  %282 = vrot.lane.b32.xlu0 %v797_v13, %s674_s18 }
  0x2f   : > { %224 = vst.msk [vmem:[%s711_s17 + $0x1e0] sm:$0xff] %vm193_vm0, %v191_v31  ;;  %587 = vst.msk [vmem:[%s711_s17 + $0x1f0] sm:$0xff] %vm193_vm0, %v191_v31 }
  0x31   : > { %288 = vrot.lane.b32.xlu1 %v820_v14, %s674_s18 }
  0x32   : > { %286 = vrot.lane.b32.xlu0 %v823_v15, %s674_s18 }
  0x35   : > { %292 = vrot.lane.b32.xlu1 %v178_v16, %s674_s18 }
  0x36   : > { %290 = vrot.lane.b32.xlu0 %v177_v17, %s674_s18 }
  0x39   : > { %296 = vrot.lane.b32.xlu1 %v180_v18, %s674_s18 }
  0x3a   : > { %294 = vrot.lane.b32.xlu0 %v179_v19, %s674_s18 }
  0x3d   : > { %300 = vrot.lane.b32.xlu1 %v182_v20, %s674_s18 }
  0x3e   : > { %298 = vrot.lane.b32.xlu0 %v181_v21, %s674_s18 }
  0x41   : > { %304 = vrot.lane.b32.xlu1 %v184_v22, %s674_s18 }
  0x42   : > { %302 = vrot.lane.b32.xlu0 %v183_v23, %s674_s18 }
  0x45   : > { %308 = vrot.lane.b32.xlu1 %v186_v24, %s674_s18 }
  0x46   : > { %306 = vrot.lane.b32.xlu0 %v185_v25, %s674_s18 }
  0x49   : > { %312 = vrot.lane.b32.xlu1 %v188_v26, %s674_s18 }
  0x4a   : > { %310 = vrot.lane.b32.xlu0 %v187_v27, %s674_s18 }
  0x4d   : > { %316 = vrot.lane.b32.xlu1 %v190_v28, %s674_s18 }
  0x4e   : > { %314 = vrot.lane.b32.xlu0 %v189_v29, %s674_s18 }
  0x51   : > { %320 = vrot.lane.b32.xlu1 %v192_v30, %s674_s18 }
  0x52   : > { %318 = vrot.lane.b32.xlu0 %v191_v31, %s674_s18 }
  0x82   : > { %v263_v32 = vpop.permute.xlu1 %262  ;;  %v259_v33 = vpop.permute.xlu0 %258 }
  0x83   : > { %357 = vst.msk [vmem:[%s711_s17 + $0x20] sm:$0xff] %vm354_vm1, %v263_v32  ;;  %591 = vst.msk [vmem:[%s711_s17 + $0x30] sm:$0xff] %vm354_vm1, %v263_v32 }
  0x84   : > { %355 = vst.msk [vmem:[%s711_s17] sm:$0xff] %vm354_vm1, %v259_v33  ;;  %589 = vst.msk [vmem:[%s711_s17 + $0x10] sm:$0xff] %vm354_vm1, %v259_v33 }
  0x88   : > { %v265_v34 = vpop.permute.xlu1 %264 }
  0x89   : > { %v261_v35 = vpop.permute.xlu0 %260  ;;  %358 = vst.msk [vmem:[%s711_s17 + $0x28] sm:$0xff] %vm354_vm1, %v265_v34  ;;  %592 = vst.msk [vmem:[%s711_s17 + $0x38] sm:$0xff] %vm354_vm1, %v265_v34 }
  0x8a   : > { %356 = vst.msk [vmem:[%s711_s17 + $0x8] sm:$0xff] %vm354_vm1, %v261_v35  ;;  %590 = vst.msk [vmem:[%s711_s17 + $0x18] sm:$0xff] %vm354_vm1, %v261_v35 }
  0x8f   : > { %v269_v36 = vpop.permute.xlu1 %268  ;;  %v267_v37 = vpop.permute.xlu0 %266 }
  0x90   : > { %360 = vst.msk [vmem:[%s711_s17 + $0x48] sm:$0xff] %vm354_vm1, %v269_v36  ;;  %594 = vst.msk [vmem:[%s711_s17 + $0x58] sm:$0xff] %vm354_vm1, %v269_v36 }
  0x91   : > { %359 = vst.msk [vmem:[%s711_s17 + $0x40] sm:$0xff] %vm354_vm1, %v267_v37  ;;  %593 = vst.msk [vmem:[%s711_s17 + $0x50] sm:$0xff] %vm354_vm1, %v267_v37 }
  0x93   : > { %v273_v38 = vpop.permute.xlu1 %272 }
  0x94   : > { %v271_v39 = vpop.permute.xlu0 %270  ;;  %362 = vst.msk [vmem:[%s711_s17 + $0x68] sm:$0xff] %vm354_vm1, %v273_v38  ;;  %596 = vst.msk [vmem:[%s711_s17 + $0x78] sm:$0xff] %vm354_vm1, %v273_v38 }
  0x95   : > { %361 = vst.msk [vmem:[%s711_s17 + $0x60] sm:$0xff] %vm354_vm1, %v271_v39  ;;  %595 = vst.msk [vmem:[%s711_s17 + $0x70] sm:$0xff] %vm354_vm1, %v271_v39 }
  0x97   : > { %v277_v40 = vpop.permute.xlu1 %276 }
  0x98   : > { %v275_v41 = vpop.permute.xlu0 %274  ;;  %364 = vst.msk [vmem:[%s711_s17 + $0x88] sm:$0xff] %vm354_vm1, %v277_v40  ;;  %598 = vst.msk [vmem:[%s711_s17 + $0x98] sm:$0xff] %vm354_vm1, %v277_v40 }
  0x99   : > { %363 = vst.msk [vmem:[%s711_s17 + $0x80] sm:$0xff] %vm354_vm1, %v275_v41  ;;  %597 = vst.msk [vmem:[%s711_s17 + $0x90] sm:$0xff] %vm354_vm1, %v275_v41 }
  0x9b   : > { %v281_v42 = vpop.permute.xlu1 %280 }
  0x9c   : > { %v279_v43 = vpop.permute.xlu0 %278  ;;  %366 = vst.msk [vmem:[%s711_s17 + $0xa8] sm:$0xff] %vm354_vm1, %v281_v42  ;;  %600 = vst.msk [vmem:[%s711_s17 + $0xb8] sm:$0xff] %vm354_vm1, %v281_v42 }
  0x9d   : > { %365 = vst.msk [vmem:[%s711_s17 + $0xa0] sm:$0xff] %vm354_vm1, %v279_v43  ;;  %599 = vst.msk [vmem:[%s711_s17 + $0xb0] sm:$0xff] %vm354_vm1, %v279_v43 }
  0x9f   : > { %v285_v44 = vpop.permute.xlu1 %284 }
  0xa0   : > { %v283_v45 = vpop.permute.xlu0 %282  ;;  %368 = vst.msk [vmem:[%s711_s17 + $0xc8] sm:$0xff] %vm354_vm1, %v285_v44  ;;  %602 = vst.msk [vmem:[%s711_s17 + $0xd8] sm:$0xff] %vm354_vm1, %v285_v44 }
  0xa1   : > { %367 = vst.msk [vmem:[%s711_s17 + $0xc0] sm:$0xff] %vm354_vm1, %v283_v45  ;;  %601 = vst.msk [vmem:[%s711_s17 + $0xd0] sm:$0xff] %vm354_vm1, %v283_v45 }
  0xa3   : > { %v289_v46 = vpop.permute.xlu1 %288 }
  0xa4   : > { %v287_v47 = vpop.permute.xlu0 %286  ;;  %370 = vst.msk [vmem:[%s711_s17 + $0xe8] sm:$0xff] %vm354_vm1, %v289_v46  ;;  %604 = vst.msk [vmem:[%s711_s17 + $0xf8] sm:$0xff] %vm354_vm1, %v289_v46 }
  0xa5   : > { %369 = vst.msk [vmem:[%s711_s17 + $0xe0] sm:$0xff] %vm354_vm1, %v287_v47  ;;  %603 = vst.msk [vmem:[%s711_s17 + $0xf0] sm:$0xff] %vm354_vm1, %v287_v47 }
  0xa7   : > { %v293_v48 = vpop.permute.xlu1 %292 }
  0xa8   : > { %v291_v49 = vpop.permute.xlu0 %290  ;;  %372 = vst.msk [vmem:[%s711_s17 + $0x108] sm:$0xff] %vm354_vm1, %v293_v48  ;;  %606 = vst.msk [vmem:[%s711_s17 + $0x118] sm:$0xff] %vm354_vm1, %v293_v48 }
  0xa9   : > { %371 = vst.msk [vmem:[%s711_s17 + $0x100] sm:$0xff] %vm354_vm1, %v291_v49  ;;  %605 = vst.msk [vmem:[%s711_s17 + $0x110] sm:$0xff] %vm354_vm1, %v291_v49 }
  0xab   : > { %v297_v50 = vpop.permute.xlu1 %296 }
  0xac   : > { %v295_v51 = vpop.permute.xlu0 %294  ;;  %374 = vst.msk [vmem:[%s711_s17 + $0x128] sm:$0xff] %vm354_vm1, %v297_v50  ;;  %608 = vst.msk [vmem:[%s711_s17 + $0x138] sm:$0xff] %vm354_vm1, %v297_v50 }
  0xad   : > { %373 = vst.msk [vmem:[%s711_s17 + $0x120] sm:$0xff] %vm354_vm1, %v295_v51  ;;  %607 = vst.msk [vmem:[%s711_s17 + $0x130] sm:$0xff] %vm354_vm1, %v295_v51 }
  0xaf   : > { %v301_v52 = vpop.permute.xlu1 %300 }
  0xb0   : > { %v299_v53 = vpop.permute.xlu0 %298  ;;  %376 = vst.msk [vmem:[%s711_s17 + $0x148] sm:$0xff] %vm354_vm1, %v301_v52  ;;  %610 = vst.msk [vmem:[%s711_s17 + $0x158] sm:$0xff] %vm354_vm1, %v301_v52 }
  0xb1   : > { %375 = vst.msk [vmem:[%s711_s17 + $0x140] sm:$0xff] %vm354_vm1, %v299_v53  ;;  %609 = vst.msk [vmem:[%s711_s17 + $0x150] sm:$0xff] %vm354_vm1, %v299_v53 }
  0xb3   : > { %v305_v54 = vpop.permute.xlu1 %304 }
  0xb4   : > { %v303_v55 = vpop.permute.xlu0 %302  ;;  %378 = vst.msk [vmem:[%s711_s17 + $0x168] sm:$0xff] %vm354_vm1, %v305_v54  ;;  %612 = vst.msk [vmem:[%s711_s17 + $0x178] sm:$0xff] %vm354_vm1, %v305_v54 }
  0xb5   : > { %377 = vst.msk [vmem:[%s711_s17 + $0x160] sm:$0xff] %vm354_vm1, %v303_v55  ;;  %611 = vst.msk [vmem:[%s711_s17 + $0x170] sm:$0xff] %vm354_vm1, %v303_v55 }
  0xb7   : > { %v309_v56 = vpop.permute.xlu1 %308 }
  0xb8   : > { %v307_v57 = vpop.permute.xlu0 %306  ;;  %380 = vst.msk [vmem:[%s711_s17 + $0x188] sm:$0xff] %vm354_vm1, %v309_v56  ;;  %614 = vst.msk [vmem:[%s711_s17 + $0x198] sm:$0xff] %vm354_vm1, %v309_v56 }
  0xb9   : > { %379 = vst.msk [vmem:[%s711_s17 + $0x180] sm:$0xff] %vm354_vm1, %v307_v57  ;;  %613 = vst.msk [vmem:[%s711_s17 + $0x190] sm:$0xff] %vm354_vm1, %v307_v57 }
  0xbb   : > { %v313_v58 = vpop.permute.xlu1 %312 }
  0xbc   : > { %v311_v59 = vpop.permute.xlu0 %310  ;;  %382 = vst.msk [vmem:[%s711_s17 + $0x1a8] sm:$0xff] %vm354_vm1, %v313_v58  ;;  %616 = vst.msk [vmem:[%s711_s17 + $0x1b8] sm:$0xff] %vm354_vm1, %v313_v58 }
  0xbd   : > { %381 = vst.msk [vmem:[%s711_s17 + $0x1a0] sm:$0xff] %vm354_vm1, %v311_v59  ;;  %615 = vst.msk [vmem:[%s711_s17 + $0x1b0] sm:$0xff] %vm354_vm1, %v311_v59 }
  0xbf   : > { %v317_v60 = vpop.permute.xlu1 %316 }
  0xc0   : > { %v315_v61 = vpop.permute.xlu0 %314  ;;  %384 = vst.msk [vmem:[%s711_s17 + $0x1c8] sm:$0xff] %vm354_vm1, %v317_v60  ;;  %618 = vst.msk [vmem:[%s711_s17 + $0x1d8] sm:$0xff] %vm354_vm1, %v317_v60 }
  0xc1   : > { %383 = vst.msk [vmem:[%s711_s17 + $0x1c0] sm:$0xff] %vm354_vm1, %v315_v61  ;;  %617 = vst.msk [vmem:[%s711_s17 + $0x1d0] sm:$0xff] %vm354_vm1, %v315_v61 }
  0xc3   : > { %v321_v62 = vpop.permute.xlu1 %320 }
  0xc4   : > { %v319_v63 = vpop.permute.xlu0 %318  ;;  %386 = vst.msk [vmem:[%s711_s17 + $0x1e8] sm:$0xff] %vm354_vm1, %v321_v62  ;;  %620 = vst.msk [vmem:[%s711_s17 + $0x1f8] sm:$0xff] %vm354_vm1, %v321_v62 }
  0xc5   : > { %385 = vst.msk [vmem:[%s711_s17 + $0x1e0] sm:$0xff] %vm354_vm1, %v319_v63  ;;  %619 = vst.msk [vmem:[%s711_s17 + $0x1f0] sm:$0xff] %vm354_vm1, %v319_v63 }
  0xc6 PF: > { %s11_s8 = sadd.s32 1, %s672_s8   ;;  %s1094_s6 = smov %s668_s7 }
  0xc7   : > { %p8_p5 = scmp.ge.s32.totalorder %s11_s8, 4   ;;  %s1095_s7 = smov %s1097_s9 }
  0xc9   :  { %10 = sbr.rel (!%p8_p5) target bundleno = 2 (0x2), region = 55 }

</bundles_post_ra>
